<compile_context>
chip_gen: v6e
topology: v6e:2x2x1
jax: 0.10.0
libtpu: 0.0.40
codegen_flags: <defaults>
</compile_context>

<pallas_src>
import functools

import jax
import jax.numpy as jnp
from jax.experimental import pallas as pl
from jax.experimental.pallas import tpu as pltpu

BN_EPS = 1e-5     # PyTorch BatchNorm1d default eps
L2_EPS = 1e-12    # F.normalize default eps


def _make_bnneck_kernel(norm: bool, mxu_dtype):
    def kernel(x_ref, bn_ref, w_ref, feat_ref, logit_ref, f_scr):
        """One (part-block, class-tile) grid step.

        x_ref     : (pp, n, c)    part-major activations        (resident over class axis)
        bn_ref    : (pp, 2, c)    fused BN scale / shift        (resident over class axis)
        w_ref     : (pp, c, tc)   per-part classifier weight tile (streamed)
        feat_ref  : (pp, n, c)    output features               (resident over class axis)
        logit_ref : (pp, n, tc)   output logits tile
        f_scr     : (pp, n, c)    f32 scratch holding post-BN (+L2) features
        """
        j = pl.program_id(1)

        # BN + feature normalization: once per part block, reused by all class tiles.
        @pl.when(j == 0)
        def _():
            x = x_ref[...].astype(jnp.float32)                       # (pp, n, c)
            scale = bn_ref[:, 0:1, :].astype(jnp.float32)            # (pp, 1, c)
            shift = bn_ref[:, 1:2, :].astype(jnp.float32)
            xn = x * scale + shift
            if norm:
                # F.normalize(feature, dim=-1): L2 over channels (lane reduction);
                # rsqrt goes to the EUP slot.
                sumsq = jnp.sum(xn * xn, axis=-1, keepdims=True)
                f = xn * jax.lax.rsqrt(jnp.maximum(sumsq, L2_EPS * L2_EPS))
            else:
                f = xn
            f_scr[...] = f
            feat_ref[...] = f.astype(feat_ref.dtype)

        f = f_scr[...]                                               # (pp, n, c) f32
        w = w_ref[...]                                               # (pp, c, tc) raw dtype

        # Batched matmul over the part axis on the MXU (bf16 operands, f32 acc);
        # contract the channel dim of both operands directly — no transpose.
        logits = jax.lax.dot_general(
            f.astype(mxu_dtype), w.astype(mxu_dtype),
            dimension_numbers=(((2,), (1,)), ((0,), (0,))),
            preferred_element_type=jnp.float32)                      # (pp, n, tc)

        if norm:
            # Deferred F.normalize(fc_bin, dim=1): column scaling commutes with
            # the contraction, so scale the (small) logits tile instead of the
            # full (c, tc) weight tile.
            w32 = w.astype(jnp.float32)
            w_sumsq = jnp.sum(w32 * w32, axis=1, keepdims=True)      # (pp, 1, tc)
            logits = logits * jax.lax.rsqrt(jnp.maximum(w_sumsq, L2_EPS * L2_EPS))

        logit_ref[...] = logits.astype(logit_ref.dtype)

    return kernel


def _vmem_capacity_bytes():
    try:
        return pltpu.get_tpu_info().vmem_capacity_bytes
    except Exception:
        return 64 << 20   # assume the smallest (v7x-sized) VMEM if the query fails


def _pick_class_block(num_cls):
    """Largest lane-dense (multiple-of-128) divisor of num_cls under a
    per-generation cap (bigger tiles on 128 MiB v5e/v6e, smaller on 64 MiB v7x)."""
    cap = 2048 if _vmem_capacity_bytes() >= (100 << 20) else 1024
    if num_cls <= cap:
        return num_cls
    tc = (cap // 128) * 128
    while tc >= 128:
        if num_cls % tc == 0:
            return tc
        tc -= 128
    return num_cls   # no lane-dense divisor <= cap; stream the whole class axis


@functools.partial(
    jax.jit,
    static_argnames=("norm", "parts_per_block", "class_block", "mxu_dtype",
                     "part_major_outputs"))
def separate_bn_necks(x, fc_bin, bn_gamma, bn_beta, bn_mean, bn_var, *,
                      norm=True, parts_per_block=1, class_block=None,
                      mxu_dtype=jnp.bfloat16, part_major_outputs=False):
    """x: [n, c, p]; fc_bin: [p, c, C]; BN params: [c*p] (PyTorch flat order).

    Returns (feature, logits).  Default layout matches PyTorch exactly:
    feature [n, c, p], logits [n, C, p].  `part_major_outputs=True` returns the
    lane-dense kernel layout (p, n, c) / (p, n, C) and skips the final
    (non-lane-dense) transposes for downstream consumers that can take it.
    """
    n, c, p = x.shape
    num_cls = fc_bin.shape[-1]

    pp = parts_per_block
    assert p % pp == 0, "parts_per_block must divide parts_num"

    tc = _pick_class_block(num_cls) if class_block is None else class_block
    assert tc == num_cls or (num_cls % tc == 0 and tc % 128 == 0), \
        "class_block must divide class_num and be a multiple of 128 (or equal class_num)"

    # ---- layout plumbing only ----
    x_pnc = jnp.transpose(x, (2, 0, 1))                              # (p, n, c)

    # BN params are indexed over the flattened (c, p) axis: flat = c_idx * p + p_idx.
    def to_pc(v):
        return jnp.transpose(v.astype(jnp.float32).reshape(c, p), (1, 0))   # (p, c)

    inv_std = jax.lax.rsqrt(bn_var.astype(jnp.float32) + BN_EPS)
    scale = bn_gamma.astype(jnp.float32) * inv_std
    shift = bn_beta.astype(jnp.float32) - bn_mean.astype(jnp.float32) * scale
    bn_packed = jnp.stack([to_pc(scale), to_pc(shift)], axis=1)      # (p, 2, c)

    const_over_cls = lambda i, j: (i, 0, 0)
    feat_pnc, logits_pnc = pl.pallas_call(
        _make_bnneck_kernel(norm, mxu_dtype),
        out_shape=(jax.ShapeDtypeStruct((p, n, c), x.dtype),
                   jax.ShapeDtypeStruct((p, n, num_cls), x.dtype)),
        grid_spec=pltpu.PrefetchScalarGridSpec(
            num_scalar_prefetch=0,
            grid=(p // pp, num_cls // tc),
            in_specs=[
                pl.BlockSpec((pp, n, c), const_over_cls),            # x (resident over j)
                pl.BlockSpec((pp, 2, c), const_over_cls),            # BN scale/shift
                # TODO(synk): on v5e consider pipeline_mode=pl.Buffered(3) here if
                # weight-DMA latency is still exposed after tiling.
                pl.BlockSpec((pp, c, tc), lambda i, j: (i, 0, j)),    # fc_bin (streamed)
            ],
            out_specs=(
                pl.BlockSpec((pp, n, c), const_over_cls),             # feature
                pl.BlockSpec((pp, n, tc), lambda i, j: (i, 0, j)),    # logits
            ),
            scratch_shapes=[pltpu.VMEM((pp, n, c), jnp.float32)],
        ),
        compiler_params=pltpu.CompilerParams(
            dimension_semantics=("parallel", "arbitrary")),
    )(x_pnc, bn_packed, fc_bin)

    if part_major_outputs:
        return feat_pnc, logits_pnc                                  # (p,n,c), (p,n,C)

    # PyTorch layout (note: these XLA transposes are not lane-dense; prefer
    # part_major_outputs=True when the consumer can take (p, n, C)).
    feature = jnp.transpose(feat_pnc, (1, 2, 0))                     # (n, c, p)
    logits = jnp.transpose(logits_pnc, (1, 2, 0))                    # (n, C, p)
    return feature, logits


def _reference(x, fc_bin, gamma, beta, mean, var, norm=True):
    """Pure-JAX mirror of the PyTorch module (eval-mode BN, f32 throughout)."""
    n, c, p = x.shape
    xf = x.reshape(n, c * p).astype(jnp.float32)
    xbn = (xf - mean) / jnp.sqrt(var + BN_EPS) * gamma + beta
    xbn = xbn.reshape(n, c, p)
    feature = jnp.transpose(xbn, (2, 0, 1))                          # (p, n, c)
    w = fc_bin.astype(jnp.float32)
    if norm:
        feature = feature / jnp.maximum(
            jnp.linalg.norm(feature, axis=-1, keepdims=True), L2_EPS)
        w = w / jnp.maximum(jnp.linalg.norm(w, axis=1, keepdims=True), L2_EPS)
    logits = jnp.einsum('pnc,pck->pnk', feature, w)
    return jnp.transpose(feature, (1, 2, 0)), jnp.transpose(logits, (1, 2, 0))


if __name__ == "__main__":
    # Small shapes consistent with the module (parts / channels / classes scaled
    # down); class_block=128 exercises the class-tiling grid axis (grid = (4, 4)).
    n, c, num_cls, p = 8, 128, 512, 4

    key = jax.random.PRNGKey(0)
    k1, k2, k3, k4, k5, k6 = jax.random.split(key, 6)
    x = jax.random.normal(k1, (n, c, p), dtype=jnp.float32)
    fc_bin = jax.random.normal(k2, (p, c, num_cls), dtype=jnp.float32) * 0.05
    bn_gamma = jax.random.uniform(k3, (c * p,), jnp.float32, 0.5, 1.5)
    bn_beta = jax.random.normal(k4, (c * p,), dtype=jnp.float32) * 0.1
    bn_mean = jax.random.normal(k5, (c * p,), dtype=jnp.float32) * 0.1
    bn_var = jax.random.uniform(k6, (c * p,), jnp.float32, 0.5, 1.5)

    # TODO(synk): training-mode BatchNorm1d (batch statistics + running-stat
    # update) and the parallel_BN1d=False per-part BN branch are not implemented;
    # this kernel runs the eval-mode forward with running statistics.
    feature, logits = separate_bn_necks(
        x, fc_bin, bn_gamma, bn_beta, bn_mean, bn_var,
        norm=True, parts_per_block=1, class_block=128)
    jax.block_until_ready((feature, logits))

    r_feat, r_logits = _reference(x, fc_bin, bn_gamma, bn_beta, bn_mean, bn_var)
    assert feature.shape == (n, c, p) and logits.shape == (n, num_cls, p)
    # Features are computed in f32 — tight tolerance.
    assert jnp.allclose(feature, r_feat, rtol=1e-4, atol=1e-4), "feature mismatch"
    # Logits use bf16 MXU operands (f32 accumulation) — reid-level tolerance.
    assert jnp.allclose(logits, r_logits, rtol=2e-2, atol=2e-2), "logits mismatch"

    print("KERNEL_OK")
</pallas_src>

<mosaic_0001>
module attributes {stable_mosaic.version = 11 : i64} {
  func.func @kernel(%arg0: i32, %arg1: i32, %arg2: memref<1x8x128xf32, #tpu.memory_space<vmem>>, %arg3: memref<1x2x128xf32, #tpu.memory_space<vmem>>, %arg4: memref<1x128x128xf32, #tpu.memory_space<vmem>>, %arg5: memref<1x8x128xf32, #tpu.memory_space<vmem>>, %arg6: memref<1x8x128xf32, #tpu.memory_space<vmem>>, %arg7: memref<1x8x128xf32, #tpu.memory_space<vmem>>) attributes {dimension_semantics = [#tpu.dimension_semantics<parallel>, #tpu.dimension_semantics<arbitrary>], iteration_bounds = array<i64: 4, 4>, scalar_prefetch = 0 : i64, scratch_operands = 1 : i64, tpu.core_type = #tpu.core_type<tc>, window_params = [{transform_indices = @transform_0, window_bounds = array<i64: 1, 8, 128>}, {transform_indices = @transform_1, window_bounds = array<i64: 1, 2, 128>}, {transform_indices = @transform_2, window_bounds = array<i64: 1, 128, 128>}, {transform_indices = @transform_3, window_bounds = array<i64: 1, 8, 128>}, {transform_indices = @transform_4, window_bounds = array<i64: 1, 8, 128>}]} {
    %c0_i32 = arith.constant 0 : i32
    %0 = arith.cmpi eq, %arg1, %c0_i32 : i32
    %1 = arith.extui %0 : i1 to i32
    %c0_i32_0 = arith.constant 0 : i32
    %2 = arith.cmpi ne, %1, %c0_i32_0 : i32
    scf.if %2 {
      %c0_11 = arith.constant 0 : index
      %c0_12 = arith.constant 0 : index
      %c0_13 = arith.constant 0 : index
      %17 = vector.load %arg2[%c0_11, %c0_12, %c0_13] : memref<1x8x128xf32, #tpu.memory_space<vmem>>, vector<1x8x128xf32>
      %c0_14 = arith.constant 0 : index
      %c0_15 = arith.constant 0 : index
      %c0_16 = arith.constant 0 : index
      %18 = vector.load %arg3[%c0_14, %c0_15, %c0_16] : memref<1x2x128xf32, #tpu.memory_space<vmem>>, vector<1x1x128xf32>
      %c0_17 = arith.constant 0 : index
      %c1 = arith.constant 1 : index
      %c0_18 = arith.constant 0 : index
      %19 = vector.load %arg3[%c0_17, %c1, %c0_18] : memref<1x2x128xf32, #tpu.memory_space<vmem>>, vector<1x1x128xf32>
      %20 = vector.broadcast %18 : vector<1x1x128xf32> to vector<1x8x128xf32>
      %21 = arith.mulf %17, %20 : vector<1x8x128xf32>
      %22 = vector.broadcast %19 : vector<1x1x128xf32> to vector<1x8x128xf32>
      %23 = arith.addf %21, %22 : vector<1x8x128xf32>
      %24 = arith.mulf %23, %23 : vector<1x8x128xf32>
      %cst_19 = arith.constant dense<0.000000e+00> : vector<1x8xf32>
      %25 = vector.multi_reduction <add>, %24, %cst_19 [2] : vector<1x8x128xf32> to vector<1x8xf32>
      %26 = vector.shape_cast %25 : vector<1x8xf32> to vector<1x8x1xf32>
      %cst_20 = arith.constant 1.000000e-24 : f32
      %27 = vector.broadcast %cst_20 : f32 to vector<1x8x1xf32>
      %28 = arith.maximumf %26, %27 : vector<1x8x1xf32>
      %29 = math.rsqrt %28 : vector<1x8x1xf32>
      %30 = vector.broadcast %29 : vector<1x8x1xf32> to vector<1x8x128xf32>
      %31 = arith.mulf %23, %30 : vector<1x8x128xf32>
      %c0_21 = arith.constant 0 : index
      %c0_22 = arith.constant 0 : index
      %c0_23 = arith.constant 0 : index
      %32 = vector.load %arg7[%c0_21, %c0_22, %c0_23] : memref<1x8x128xf32, #tpu.memory_space<vmem>>, vector<1x8x128xf32>
      tpu.vector_store %arg7[%c0_21, %c0_22, %c0_23], %31 {strides = array<i32>} : memref<1x8x128xf32, #tpu.memory_space<vmem>>, vector<1x8x128xf32>,
      %c0_24 = arith.constant 0 : index
      %c0_25 = arith.constant 0 : index
      %c0_26 = arith.constant 0 : index
      %33 = vector.load %arg5[%c0_24, %c0_25, %c0_26] : memref<1x8x128xf32, #tpu.memory_space<vmem>>, vector<1x8x128xf32>
      tpu.vector_store %arg5[%c0_24, %c0_25, %c0_26], %31 {strides = array<i32>} : memref<1x8x128xf32, #tpu.memory_space<vmem>>, vector<1x8x128xf32>,
    } else {
    }
    %c0 = arith.constant 0 : index
    %c0_1 = arith.constant 0 : index
    %c0_2 = arith.constant 0 : index
    %3 = vector.load %arg7[%c0, %c0_1, %c0_2] : memref<1x8x128xf32, #tpu.memory_space<vmem>>, vector<1x8x128xf32>
    %c0_3 = arith.constant 0 : index
    %c0_4 = arith.constant 0 : index
    %c0_5 = arith.constant 0 : index
    %4 = vector.load %arg4[%c0_3, %c0_4, %c0_5] : memref<1x128x128xf32, #tpu.memory_space<vmem>>, vector<1x128x128xf32>
    %5 = arith.truncf %3 : vector<1x8x128xf32> to vector<1x8x128xbf16>
    %6 = arith.truncf %4 : vector<1x128x128xf32> to vector<1x128x128xbf16>
    %cst = arith.constant dense<0.000000e+00> : vector<1x8x128xf32>
    %7 = tpu.matmul %5, %6, %cst {dimension_numbers = #tpu.dot_dimension_numbers<[2], [1], [1], [2], [0, 0, 0, 1, 1, 2], [0], [0]>} : vector<1x8x128xbf16>, vector<1x128x128xbf16>, vector<1x8x128xf32> -> vector<1x8x128xf32>
    %8 = arith.mulf %4, %4 : vector<1x128x128xf32>
    %cst_6 = arith.constant dense<0.000000e+00> : vector<1x128xf32>
    %9 = vector.multi_reduction <add>, %8, %cst_6 [1] : vector<1x128x128xf32> to vector<1x128xf32>
    %10 = vector.shape_cast %9 : vector<1x128xf32> to vector<1x1x128xf32>
    %cst_7 = arith.constant 1.000000e-24 : f32
    %11 = vector.broadcast %cst_7 : f32 to vector<1x1x128xf32>
    %12 = arith.maximumf %10, %11 : vector<1x1x128xf32>
    %13 = math.rsqrt %12 : vector<1x1x128xf32>
    %14 = vector.broadcast %13 : vector<1x1x128xf32> to vector<1x8x128xf32>
    %15 = arith.mulf %7, %14 : vector<1x8x128xf32>
    %c0_8 = arith.constant 0 : index
    %c0_9 = arith.constant 0 : index
    %c0_10 = arith.constant 0 : index
    %16 = vector.load %arg6[%c0_8, %c0_9, %c0_10] : memref<1x8x128xf32, #tpu.memory_space<vmem>>, vector<1x8x128xf32>
    tpu.vector_store %arg6[%c0_8, %c0_9, %c0_10], %15 {strides = array<i32>} : memref<1x8x128xf32, #tpu.memory_space<vmem>>, vector<1x8x128xf32>,
    return
  }
  func.func @transform_0(%arg0: i32, %arg1: i32) -> (i32, i32, i32) {
    %c0_i32 = arith.constant 0 : i32
    %c0_i32_0 = arith.constant 0 : i32
    %c0_i32_1 = arith.constant 0 : i32
    return %arg0, %c0_i32, %c0_i32_0 : i32, i32, i32
  }
  func.func @transform_1(%arg0: i32, %arg1: i32) -> (i32, i32, i32) {
    %c0_i32 = arith.constant 0 : i32
    %c0_i32_0 = arith.constant 0 : i32
    %c0_i32_1 = arith.constant 0 : i32
    return %arg0, %c0_i32, %c0_i32_0 : i32, i32, i32
  }
  func.func @transform_2(%arg0: i32, %arg1: i32) -> (i32, i32, i32) {
    %c0_i32 = arith.constant 0 : i32
    %c0_i32_0 = arith.constant 0 : i32
    return %arg0, %c0_i32, %arg1 : i32, i32, i32
  }
  func.func @transform_3(%arg0: i32, %arg1: i32) -> (i32, i32, i32) {
    %c0_i32 = arith.constant 0 : i32
    %c0_i32_0 = arith.constant 0 : i32
    %c0_i32_1 = arith.constant 0 : i32
    return %arg0, %c0_i32, %c0_i32_0 : i32, i32, i32
  }
  func.func @transform_4(%arg0: i32, %arg1: i32) -> (i32, i32, i32) {
    %c0_i32 = arith.constant 0 : i32
    %c0_i32_0 = arith.constant 0 : i32
    return %arg0, %c0_i32, %arg1 : i32, i32, i32
  }
}

</mosaic_0001>

<bundles_post_ra>
// kernel: separate_bn_necks.1
= control target key start
LH: loop header
LB: loop body
LE: loop exit
PB: predicated region body
PF: predicated region fallthrough
CT: control target
= control target key end

     0   :  { %s999_s0 = inlined_call_operand.vmem [shape: f32[4,8,128], index: 0, kind: input, shape index: {}]   ;;  %s1000_s1 = inlined_call_operand.vmem [shape: f32[4,2,128], index: 1, kind: input, shape index: {}]   ;;  %s1001_s2 = inlined_call_operand.hbm [shape: f32[4,128,512], index: 2, kind: input, shape index: {}]   ;;  %s1002_s3 = inlined_call_operand.vmem [shape: f32[4,8,128], index: 3, kind: output, shape index: {0}]   ;;  %s1003_s4 = inlined_call_operand.vmem [shape: f32[4,8,512], index: 4, kind: output, shape index: {1}]  }
   0x1   :  { %1006 = sst [smem:[#allocation8_spill]] %s1001_s2 }
   0x2   :  { %10 = vsyncpa [#allocation4], 0 }
   0x3   :  { %12 = vsyncpa [#allocation4 + $0x1], 0  ;;  %s823_s15 = smov 0   ;;  %s825_s16 = smov 0  }
   0x4   :  { %s827_s17 = smov 0   ;;  %s829_s18 = smov 0  }
   0x5   :  { %s831_s19 = smov 0   ;;  %s833_s20 = smov 0  }
   0x6   :  { %s835_s21 = smov 0   ;;  %s837_s22 = smov 0  }
   0x7 LB: > { %s568_s23 = sadd.s32 4294967295, %s790_s22   ;;  %s27_s24 = sadd.s32 1, %s782_s20  ;;  %s790_s22 = sphi %s837_s22, %s18_s22   ;;  %s786_s21 = sphi %s835_s21, %s1021_s21   ;;  %s782_s20 = sphi %s833_s20, %s1020_s20   ;;  %s778_s19 = sphi %s831_s19, %s1019_s19   ;;  %s774_s18 = sphi %s829_s18, %s1018_s18   ;;  %s770_s17 = sphi %s827_s17, %s1017_s17   ;;  %s766_s16 = sphi %s825_s16, %s1016_s16   ;;  %s762_s15 = sphi %s823_s15, %s1015_s15  }
   0x8   : > { %p28_p0 = scmp.ge.s32.totalorder %s27_s24, 4  ;;  %s30_s25 = sadd.s32 1, %s786_s21 }
   0x9   : > { %s91_s26 = sadd.s32 1, %s770_s17  ;;  %p98_p1 = scmp.ne.s32.totalorder %s770_s17, %s766_s16 }
   0xa   : > { %s1023_s24 = smov (%p28_p0, %s27_s24), 0  ;;  %s1025_s25 = smov (!%p28_p0, %s30_s25), %s786_s21 }
   0xb   : > { %1007 = sst [smem:[#allocation6_spill]] %s1023_s24  ;;  %s87_s27 = ssub.s32 %s782_s20, %s1023_s24 }
   0xc   : > { %p99_p2 = scmp.eq.s32.totalorder %s790_s22, 0  ;;  %p32_p3 = scmp.ge.s32.totalorder %s1025_s25, 4 }
   0xd   : > { %p104_p4 = scmp.ne.s32.totalorder %s766_s16, %s762_s15  ;;  %p105_p6 = scmp.eq.s32.totalorder %s568_s23, 0 }
   0xe   : > { %p874_p5 = por %p99_p2, %p98_p1  ;;  %s1027_s25 = smov (%p32_p3, %s1025_s25), 0 }
   0xf   : > { %1009 = sst [smem:[#allocation7_spill]] %s1027_s25  ;;  %p880_p7 = por %p105_p6, %p104_p4 }
  0x10   : > { %s86_s30 = ssub.s32 %s786_s21, %s1027_s25  ;;  %p622_p8 = scmp.lt.s32.totalorder %s790_s22, 16 }
  0x11   : > { %s88_s5 = sor.u32 %s87_s27, %s86_s30  ;;  %s196_s6 = sand.u32 1, %s770_s17  }
  0x12   : > { %p89_p9 = scmp.eq.s32.totalorder %s88_s5, 0  ;;  %s572_s7 = sshll.u32 %s196_s6, 7 }
  0x13   : > { %s573_s8 = sshll.u32 %s786_s21, 6  ;;  %s200_s12 = scalar_lea.vmem [#allocation3], %s572_s7 }
  0x14   : > { %s890_s9 = scalar_select %p89_p9, %s770_s17, %s91_s26  }
  0x15   : > { %s205_s10 = sadd.s32 %s782_s20, %s573_s8  ;;  %s208_s13 = sshll.u32 %s200_s12, 4  ;;  %s209_s13 = int_to_ptr.vmem [resolvable:$true] %s208_s13 }
  0x16   : > { %s574_s11 = sshll.u32 %s205_s10, 7  ;;  %s1011_s2 = sld [smem:[#allocation8_spill]] }
  0x17   : > { %p900_p10 = pnand %p622_p8, %p874_p5  ;;  %p575_p11 = scmp.ge.s32.totalorder %s790_s22, 1 }
  0x18   : > { %s197_s27 = scalar_lea.sflag [#allocation4], %s196_s6  ;;  %s709_s26 = scalar_lea.vmem %s209_s13, 2048 }
  0x19   : > { %p698_p12 = pneg %p900_p10  ;;  %p710_p13 = scmp.ne.s32.totalorder %s209_s13, %s709_s26 }
  0x1a   : > { %s792_s30 = smov [#allocation3]  }
  0x1b   : > { %p712_p0 = pnand %p710_p13, %p698_p12  ;;  %s714_s5 = sshll.u32 %s792_s30, 4  ;;  %s715_s5 = int_to_ptr.vmem [resolvable:$false] %s714_s5 }
  0x1c   : > { %s207_s23 = scalar_lea.hbm %s1011_s2, %s574_s11  ;;  %s716_s7 = scalar_lea.vmem %s715_s5, 4096 }
  0x1d   : > { %p713_p1 = pneg %p712_p0  ;;  %p717_p2 = scmp.lt.s32.totalorder %s209_s13, %s715_s5 }
  0x1e   : > { %p718_p3 = scmp.lt.s32.totalorder %s716_s7, %s709_s26 }
  0x20   : > { %p719_p4 = por %p718_p3, %p717_p2 }
  0x22   : > { %p720_p5 = pnand %p719_p4, %p713_p1 }
  0x24   : > { %723 = shalt.err (!%p720_p5)
}
  0x25   : > { %s793_s28 = smov 512   ;;  %s794_s6 = smov 128  }
  0x26   : > { %s795_s8 = smov 8   ;;  %p216_p6 = scmp.lt.s32.totalorder %s790_s22, 17 }
  0x27   : > { %621 = dma.hbm_to_vmem [thread:$0]  (!%p900_p10), %s207_s23, 2048, %s209_s13, %s197_s27, %s793_s28, %s794_s6, %s795_s8  }
  0x28   : > { %p217_p8 = pnand %p575_p11, %p216_p6 }
  0x29   : > { %s222_s10 = sand.u32 (!%p217_p8), 1, %s766_s16  }
  0x2a   : > { %220 = sbr.rel (%p217_p8) target bundleno = 458 (0x1ca), region = 32  ;;  %s576_s11 = sshll.u32 (!%p217_p8), %s222_s10, 7 }
  0x2b   : > { %s223_s12 = scalar_lea.sflag (!%p217_p8), [#allocation4], %s222_s10  ;;  %s913_s14 = scalar_lea.vmem (!%p217_p8), [#allocation3], %s576_s11 }
  0x2f   : > { %757 = dma.done.wait (%p880_p7), %s223_s12, 2048  }
  0x30   : > { %759 = vsyncadd (%p880_p7), %s223_s12, 4294965248  ;;  %p266_p9 = scmp.lt.s32.totalorder %s778_s19, 3  ;;  %p280_p10 = scmp.lt.s32.totalorder %s774_s18, 3 }
  0x31   : > { %p582_p7 = scmp.ne.s32.totalorder %s774_s18, 0 }
  0x32   : > { %s1029_s19 = smov (!%p266_p9, %s778_s19), 3 }
  0x33   : > { %s281_s25 = scalar_select %p280_p10, %s774_s18, 3 }
  0x34   : > { %s577_s13 = sshll.u32 %s1029_s19, 3  ;;  %s578_s15 = sshll.u32 %s1029_s19, 1 }
  0x35   : > { %s269_s26 = scalar_lea.vmem %s999_s0, %s577_s13  ;;  %s273_s7 = scalar_lea.vmem %s1000_s1, %s578_s15 }
  0x36   : > { %s277_s6 = scalar_lea.vmem %s1002_s3, %s577_s13  ;;  %s580_s8 = sshll.u32 %s1029_s19, 2 }
  0x37   : > { %s283_s10 = sadd.s32 %s580_s8, %s281_s25  ;;  %290 = sbr.rel (%p582_p7) target bundleno = 225 (0xe1), region = 40 }
  0x38   : > { %s581_s11 = sshll.u32 %s283_s10, 3 }
  0x39   : > { %s935_s24 = scalar_lea.vmem %s1003_s4, %s581_s11 }
  0x3c   : > { %v291_v0 = vld [vmem:[%s269_s26] sm:$0xff] }
  0x3d   : > { %v583_v1 = vld [vmem:[%s273_s7] ss:$0 sm:$0xff]  ;;  %v584_v2 = vld [vmem:[%s273_s7 + $0x1] ss:$0 sm:$0xff] }
  0x3e   : > { %v298_v3 = vmul.f32 %v583_v1, %v291_v0 }
  0x40   : > { %v303_v4 = vadd.f32 %v584_v2, %v298_v3 }
  0x42   : > { %v304_v5 = vmul.f32 %v303_v4, %v303_v4 }
  0x44   : > { %305 = vadd.xlane.f32.xlu0 %v304_v5 }
  0xcd   : > { %v306_v6 = vpop.xlane.xlu0 %305 }
  0xce   : > { %v307_v7 = vmax.f32 %v306_v6, 1e-24 }
  0xd0   : > { %692 = vrsqrt.f32 %v307_v7 }
  0xdd   : > { %v693_v8 = vpop.eup %692 }
  0xde   : > { %v309_v9 = vmul.f32 %v693_v8, %v303_v4 }
  0xe0   : > { %310 = vst [vmem:[#allocation2] sm:$0xff] %v309_v9  ;;  %311 = vst [vmem:[%s277_s6] sm:$0xff] %v309_v9 }
  0xe1 PF: > { %v939_v10 = vld [vmem:[%s913_s14 + $0x70] sm:$0xff]  ;;  %v942_v11 = vld [vmem:[%s913_s14 + $0x78] sm:$0xff]  ;;  %v945_v12 = vld [vmem:[%s913_s14 + $0x60] sm:$0xff]  ;;  %v796_v13 = vmov 0.0   ;;  %vm797_vm0 = vmmov 0  }
  0xe2   : > { %596 = vmatprep.subr.bf16.mxu0 %v796_v13  ;;  %v337_v14 = vpack.c.bf16 %v942_v11, %v939_v10  ;;  %v950_v15 = vld [vmem:[%s913_s14 + $0x68] sm:$0xff]  ;;  %612 = vmatprep.mubr.msk.bf16.mxu0 %vm797_vm0, %v796_v13  ;;  %v323_v17 = vld [vmem:[%s913_s14 + $0x50] sm:$0xff]  ;;  %v324_v18 = vld [vmem:[%s913_s14 + $0x58] sm:$0xff]  ;;  %v390_v60 = vmul.f32 %v945_v12, %v945_v12  ;;  %v392_v62 = vmul.f32 %v939_v10, %v939_v10 }
  0xe3   : > { %v336_v16 = vpack.c.bf16 %v950_v15, %v945_v12  ;;  %v315_v19 = vld [vmem:[%s913_s14 + $0x10] sm:$0xff]  ;;  %v313_v20 = vld [vmem:[%s913_s14] sm:$0xff]  ;;  %v314_v21 = vld [vmem:[%s913_s14 + $0x8] sm:$0xff]  ;;  %v335_v25 = vpack.c.bf16 %v324_v18, %v323_v17  ;;  %v388_v50 = vmul.f32 %v323_v17, %v323_v17  ;;  %v389_v53 = vmul.f32 %v324_v18, %v324_v18 }
  0xe4   : > { %597 = vmatpush3.bf16.msra.mxu0 %v337_v14  ;;  %v380_v22 = vmul.f32 %v315_v19, %v315_v19  ;;  %v378_v23 = vmul.f32 %v313_v20, %v313_v20  ;;  %v379_v24 = vmul.f32 %v314_v21, %v314_v21  ;;  %v316_v26 = vld [vmem:[%s913_s14 + $0x18] sm:$0xff]  ;;  %v321_v27 = vld [vmem:[%s913_s14 + $0x40] sm:$0xff]  ;;  %v322_v28 = vld [vmem:[%s913_s14 + $0x48] sm:$0xff]  ;;  %v330_v56 = vpack.c.bf16 %v314_v21, %v313_v20 }
  0xe5   : > { %598 = vmatprep.subr.bf16.mxu0 %v796_v13  ;;  %v381_v29 = vmul.f32 %v316_v26, %v316_v26  ;;  %v317_v31 = vld [vmem:[%s913_s14 + $0x20] sm:$0xff]  ;;  %v334_v34 = vpack.c.bf16 %v322_v28, %v321_v27  ;;  %v318_v35 = vld [vmem:[%s913_s14 + $0x28] sm:$0xff]  ;;  %v319_v36 = vld [vmem:[%s913_s14 + $0x30] sm:$0xff]  ;;  %v386_v45 = vmul.f32 %v321_v27, %v321_v27  ;;  %v387_v48 = vmul.f32 %v322_v28, %v322_v28 }
  0xe6   : > { %v394_v30 = vadd.f32 %v379_v24, %v378_v23  ;;  %v382_v32 = vmul.f32 %v317_v31, %v317_v31  ;;  %v320_v37 = vld [vmem:[%s913_s14 + $0x38] sm:$0xff]  ;;  %v383_v38 = vmul.f32 %v318_v35, %v318_v35  ;;  %v384_v40 = vmul.f32 %v319_v36, %v319_v36 }
  0xe7   : > { %v333_v42 = vpack.c.bf16 %v320_v37, %v319_v36  ;;  %v385_v43 = vmul.f32 %v320_v37, %v320_v37  ;;  %v332_v47 = vpack.c.bf16 %v318_v35, %v317_v31  ;;  %v331_v52 = vpack.c.bf16 %v316_v26, %v315_v19  ;;  %v312_v57 = vld [vmem:[#allocation2] sm:$0xff] }
  0xe8   : > { %599 = vmatpush3.bf16.msra.mxu0 %v336_v16  ;;  %v395_v33 = vadd.f32 %v394_v30, %v380_v22  ;;  %v329_v59 = vpack.c.bf16 %v312_v57, %v312_v57  ;;  %v391_v61 = vmul.f32 %v950_v15, %v950_v15  ;;  %v393_v0 = vmul.f32 %v942_v11, %v942_v11 }
  0xe9   : > { %600 = vmatprep.subr.bf16.mxu0 %v796_v13 }
  0xea   : > { %v396_v39 = vadd.f32 %v395_v33, %v381_v29 }
  0xec   : > { %601 = vmatpush3.bf16.msra.mxu0 %v335_v25  ;;  %v397_v41 = vadd.f32 %v396_v39, %v382_v32 }
  0xed   : > { %602 = vmatprep.subr.bf16.mxu0 %v796_v13 }
  0xee   : > { %v398_v44 = vadd.f32 %v397_v41, %v383_v38 }
  0xf0   : > { %603 = vmatpush3.bf16.msra.mxu0 %v334_v34  ;;  %v399_v46 = vadd.f32 %v398_v44, %v384_v40 }
  0xf1   : > { %604 = vmatprep.subr.bf16.mxu0 %v796_v13 }
  0xf2   : > { %v400_v49 = vadd.f32 %v399_v46, %v385_v43 }
  0xf4   : > { %605 = vmatpush3.bf16.msra.mxu0 %v333_v42  ;;  %v401_v51 = vadd.f32 %v400_v49, %v386_v45 }
  0xf5   : > { %606 = vmatprep.subr.bf16.mxu0 %v796_v13 }
  0xf6   : > { %v402_v54 = vadd.f32 %v401_v51, %v387_v48 }
  0xf8   : > { %607 = vmatpush3.bf16.msra.mxu0 %v332_v47  ;;  %v403_v55 = vadd.f32 %v402_v54, %v388_v50 }
  0xf9   : > { %608 = vmatprep.subr.bf16.mxu0 %v796_v13 }
  0xfa   : > { %v404_v58 = vadd.f32 %v403_v55, %v389_v53 }
  0xfc   : > { %609 = vmatpush3.bf16.msra.mxu0 %v331_v52  ;;  %v405_v63 = vadd.f32 %v404_v58, %v390_v60 }
  0xfd   : > { %610 = vmatprep.subr.bf16.mxu0 %v796_v13 }
  0xfe   : > { %v406_v1 = vadd.f32 %v405_v63, %v391_v61 }
 0x100   : > { %611 = vmatpush3.bf16.msra.mxu0 %v330_v56  ;;  %v407_v2 = vadd.f32 %v406_v1, %v392_v62 }
 0x102   : > { %v408_v3 = vadd.f32 %v407_v2, %v393_v0 }
 0x103   : > { %613 = vmatmul.mubr.bf16.vlgmr.msra.gmra.mxu0 %v329_v59 }
 0x104   : > { %v409_v4 = vrot.slane %v408_v3, 4 }
 0x106   : > { %v410_v5 = vadd.f32 %v409_v4, %v408_v3 }
 0x108   : > { %v411_v6 = vrot.slane %v410_v5, 2 }
 0x10a   : > { %v412_v7 = vadd.f32 %v411_v6, %v410_v5 }
 0x10c   : > { %v413_v8 = vrot.slane %v412_v7, 1 }
 0x10e   : > { %v414_v9 = vadd.f32 %v413_v8, %v412_v7 }
 0x110   : > { %v415_v12 = vmax.f32 %v414_v9, 1e-24 }
 0x112   : > { %694 = vrsqrt.f32 %v415_v12 }
 0x11f   : > { %v695_v13 = vpop.eup %694 }
 0x1c3   : > { %v372_v14 = vpop.f32.mrf.mxu0 }
 0x1c4   : > { %v417_v15 = vmul.f32 %v695_v13, %v372_v14 }
 0x1c5   : > { %v614_v10 = vpop.f32.mrf.mxu0 }
 0x1c6   : > { %418 = vst [vmem:[%s935_s24] sm:$0xff] %v417_v15 }
 0x1c7   : > { %v375_v16 = vpop.f32.mrf.mxu0 }
 0x1c9   : > { %v615_v17 = vpop.f32.mrf.mxu0 }
 0x1ca PF: > { %s18_s22 = sadd.s32 1, %s790_s22   ;;  %s1013_s2 = sld [smem:[#allocation6_spill]] }
 0x1cb   : > { %p15_p11 = scmp.ge.s32.totalorder %s18_s22, 18   ;;  %s1014_s14 = sld [smem:[#allocation7_spill]] }
 0x1cc   : > { %s1015_s15 = smov %s766_s16  ;;  %s1016_s16 = smov %s770_s17 }
 0x1cd   : > { %s1017_s17 = smov %s890_s9  ;;  %s1018_s18 = smov %s782_s20 }
 0x1ce   : > { %s1019_s19 = smov %s786_s21  ;;  %17 = sbr.rel (!%p15_p11) target bundleno = 7 (0x7), region = 94 }
 0x1d0   : > { %s1020_s20 = smov %s1013_s2 }
 0x1d1   : > { %s1021_s21 = smov %s1014_s14 }
 0x1d3   :  { %460 = vsyncpa [#allocation4], 1 }
 0x1d4   :  { %462 = vsyncpa [#allocation4 + $0x1], 1 }

</bundles_post_ra>
